<compile_context>
chip_gen: v7x
topology: tpu7x:2x2x1
jax: 0.10.0
libtpu: 0.0.40
codegen_flags: <defaults>
</compile_context>

<pallas_src>
import math

import jax
import jax.numpy as jnp
from jax import lax
from jax.experimental import pallas as pl
from jax.experimental.pallas import tpu as pltpu


def _round_up(x, m):
    return (x + m - 1) // m * m


def _single_pass_kernel(x_ref, wscore_ref, wv_ref, bv_ref, eexp_ref, o_ref):
    """One grid step handles the whole key window of one (batch, scale)."""
    t = x_ref[0, 0]                                              # (S, d_model)

    # Scores (S, H): K projection + query contraction pre-folded into wscore.
    s = jnp.dot(t, wscore_ref[0], preferred_element_type=jnp.float32)

    # Numerically stable softmax over the key axis (axis 0), per head column.
    m = jnp.max(s, axis=0, keepdims=True)                        # (1, H)
    p = jnp.exp(s - m)                                           # (S, H) f32
    l = jnp.sum(p, axis=0, keepdims=True)                        # (1, H)

    # V projection (bias deferred to finalize).
    v = jnp.dot(t, wv_ref[...], preferred_element_type=jnp.float32)    # (S, HVp)

    # pv[h, j] = sum_k p[k, h] * v[k, j]   (K = S on the MXU).
    pv = lax.dot_general(p, v, (((0,), (0,)), ((), ())),
                         preferred_element_type=jnp.float32)     # (H, HVp)

    # Head -> packed-lane extraction, exact normalization, deferred V bias.
    eexp = eexp_ref[...]                                         # (H, HVp) 0/1
    num = jnp.sum(pv * eexp, axis=0, keepdims=True)              # (1, HVp)
    den = jnp.dot(l, eexp, preferred_element_type=jnp.float32)   # (1, HVp)
    o_ref[0, 0] = (num / den + bv_ref[...]).astype(o_ref.dtype)


def _make_online_kernel(valid_s, block_s):
    """Online-softmax kernel for key windows split over pl.program_id(2)."""
    needs_mask = (valid_s % block_s) != 0

    def kernel(x_ref, wscore_ref, wv_ref, bv_ref, eexp_ref, o_ref,
               m_ref, l_ref, acc_ref):
        s_idx = pl.program_id(2)
        n_s = pl.num_programs(2)

        @pl.when(s_idx == 0)
        def _():
            m_ref[...] = jnp.full(m_ref.shape, -jnp.inf, jnp.float32)
            l_ref[...] = jnp.zeros(l_ref.shape, jnp.float32)
            acc_ref[...] = jnp.zeros(acc_ref.shape, jnp.float32)

        t = x_ref[0, 0]                                          # (tk, d_model)
        s = jnp.dot(t, wscore_ref[0], preferred_element_type=jnp.float32)
        if needs_mask:  # mask the zero-padded key tail of the last tile
            key_idx = s_idx * block_s + lax.broadcasted_iota(
                jnp.int32, s.shape, 0)
            s = jnp.where(key_idx < valid_s, s, -jnp.inf)

        m_prev = m_ref[...]                                      # (1, H)
        m_new = jnp.maximum(m_prev, jnp.max(s, axis=0, keepdims=True))
        alpha = jnp.exp(m_prev - m_new)                          # (1, H)
        p = jnp.exp(s - m_new)                                   # (tk, H)
        l_ref[...] = alpha * l_ref[...] + jnp.sum(p, axis=0, keepdims=True)
        m_ref[...] = m_new

        v = jnp.dot(t, wv_ref[...], preferred_element_type=jnp.float32)  # (tk, HVp)
        pv = lax.dot_general(p, v, (((0,), (0,)), ((), ())),
                             preferred_element_type=jnp.float32)  # (H, HVp)
        # Broadcast alpha onto the packed lanes (tiny M=1 matmul). Only the
        # diagonal-block entries of acc are ever read at finalize, and for
        # those alpha[lane_head] == alpha[row_head], so this is exact.
        alpha_l = jnp.dot(alpha, eexp_ref[...],
                          preferred_element_type=jnp.float32)     # (1, HVp)
        acc_ref[...] = alpha_l * acc_ref[...] + pv

        @pl.when(s_idx == n_s - 1)
        def _():
            eexp = eexp_ref[...]
            num = jnp.sum(acc_ref[...] * eexp, axis=0, keepdims=True)
            den = jnp.dot(l_ref[...], eexp, preferred_element_type=jnp.float32)
            o_ref[0, 0] = (num / den + bv_ref[...]).astype(o_ref.dtype)

    return kernel


def multi_scale_decomp_forward(x, params, *, n_heads, scale_size, scale_num,
                               softmax_scale=None,
                               compute_dtype=jnp.bfloat16,
                               max_block_s=None):
    """x: (B, seq, d_model) with seq >= scale_num * scale_size.

    params (JAX convention, y = x @ W + b):
      wq, wk: (d_model, H*dk)   bq, bk: (H*dk,)
      wv:     (d_model, H*dv)   bv:     (H*dv,)
      intra_embeddings: (scale_num, 1, 1, d_model)
    Returns (B, scale_num, H*dv) in x.dtype.
    """
    B, total_len, d_model = x.shape
    wq, bq = params["wq"], params["bq"]
    wk, _bk = params["wk"], params["bk"]   # bk cancels in softmax -> unused
    wv, bv = params["wv"], params["bv"]
    intra = params["intra_embeddings"]

    H = n_heads
    HK = wk.shape[1]
    HV = wv.shape[1]
    dk = HK // H
    dv = HV // H
    S = scale_size
    assert total_len >= scale_num * S
    scale = softmax_scale if softmax_scale is not None else 1.0 / math.sqrt(dk)

    # ---- host-side folding (tiny, O(d_model*HK), batch/seq independent) ----
    # q_i = intra_emb_i @ Wq + bq   (per scale, batch independent, length 1)
    emb = intra.reshape(scale_num, d_model).astype(jnp.float32)
    q_all = jnp.dot(emb, wq.astype(jnp.float32)) + bq.astype(jnp.float32)
    q_all = q_all.reshape(scale_num, H, dk)
    # W_score[i, d, h] = scale * sum_e wk[d, h*dk+e] * q_all[i, h, e]
    wk_r = wk.astype(jnp.float32).reshape(d_model, H, dk)
    wscore = scale * jnp.einsum("dhe,ihe->idh", wk_r, q_all)  # (scale_num, d_model, H)
    # (bk's contribution is constant over the key axis -> dropped.)

    # ---- pad packed value lanes to a multiple of 128 (lane-dense store) ----
    HVp = _round_up(HV, 128)
    if HVp != HV:
        wv_p = jnp.concatenate(
            [wv, jnp.zeros((d_model, HVp - HV), wv.dtype)], axis=1)
        bv_p = jnp.concatenate([bv, jnp.zeros((HVp - HV,), bv.dtype)])
    else:
        wv_p, bv_p = wv, bv
    bv_p = bv_p.reshape(1, HVp).astype(jnp.float32)

    # eexp[h, h*dv + d] = 1; padded lanes are routed to head 0, whose padded
    # value columns are all-zero, so they contribute exact zeros (no NaNs).
    lane_head = jnp.arange(HV, dtype=jnp.int32) // dv
    eexp = (jnp.arange(H, dtype=jnp.int32)[:, None] == lane_head[None, :])
    eexp = eexp.astype(jnp.float32)
    if HVp != HV:
        pad_cols = jnp.zeros((H, HVp - HV), jnp.float32).at[0, :].set(1.0)
        eexp = jnp.concatenate([eexp, pad_cols], axis=1)          # (H, HVp)

    # ---- key-axis tiling: one fat tile when it fits, else online softmax ----
    try:
        vmem_cap = int(pltpu.get_tpu_info().vmem_capacity_bytes)
    except Exception:                      # conservative: v7x-sized VMEM
        vmem_cap = 64 * 1024 * 1024
    cdt_size = jnp.dtype(compute_dtype).itemsize
    if max_block_s is None:
        x_budget = min(vmem_cap // 4, 16 * 1024 * 1024)   # x-tile double buffer
        max_block_s = max(8, min((x_budget // (2 * d_model * cdt_size)) // 8 * 8,
                                 4096))
    if S <= max_block_s:
        block_s, n_s, pad_s = S, 1, S
    else:
        block_s = max(8, (max_block_s // 8) * 8)
        n_s = -(-S // block_s)
        pad_s = n_s * block_s

    # Key/value windows (B, scale_num, pad_s, d_model); the contiguous-prefix
    # reshape is free; zero padding only when S must be split unevenly.
    x4 = x[:, : scale_num * S, :].reshape(B, scale_num, S, d_model)
    if pad_s != S:
        x4 = jnp.pad(x4, ((0, 0), (0, 0), (0, pad_s - S), (0, 0)))
    x4 = x4.astype(compute_dtype)
    wscore = wscore.astype(compute_dtype)
    wv_p = wv_p.astype(compute_dtype)

    out_dtype = x.dtype
    out_shape = jax.ShapeDtypeStruct((B, scale_num, 1, HVp), out_dtype)

    # Explicit VMEM budget (double-buffered inputs + output + scratch), kept
    # inside v7x's 64 MiB; larger parts simply get more headroom.
    per_step = (block_s * d_model * cdt_size            # x tile
                + d_model * H * cdt_size                # wscore block
                + d_model * HVp * cdt_size              # wv
                + (HVp + H * HVp) * 4                   # bv, eexp
                + HVp * jnp.dtype(out_dtype).itemsize)  # out block
    scratch_bytes = (H * HVp + 2 * H) * 4
    vmem_needed = 2 * per_step + scratch_bytes + (1 << 20)
    vmem_limit = int(min(max(2 * vmem_needed, 32 << 20),
                         max(vmem_cap - (16 << 20), 32 << 20)))

    if n_s == 1:
        grid = (B, scale_num)
        kernel = _single_pass_kernel
        in_specs = [
            pl.BlockSpec((1, 1, block_s, d_model), lambda b, i: (b, i, 0, 0)),
            pl.BlockSpec((1, d_model, H), lambda b, i: (i, 0, 0)),
            pl.BlockSpec((d_model, HVp), lambda b, i: (0, 0)),
            pl.BlockSpec((1, HVp), lambda b, i: (0, 0)),
            pl.BlockSpec((H, HVp), lambda b, i: (0, 0)),
        ]
        out_specs = pl.BlockSpec((1, 1, 1, HVp), lambda b, i: (b, i, 0, 0))
        scratch_shapes = []
        dim_sem = ("parallel", "parallel")
    else:
        grid = (B, scale_num, n_s)
        kernel = _make_online_kernel(S, block_s)
        in_specs = [
            pl.BlockSpec((1, 1, block_s, d_model),
                         lambda b, i, s: (b, i, s, 0)),
            pl.BlockSpec((1, d_model, H), lambda b, i, s: (i, 0, 0)),
            pl.BlockSpec((d_model, HVp), lambda b, i, s: (0, 0)),
            pl.BlockSpec((1, HVp), lambda b, i, s: (0, 0)),
            pl.BlockSpec((H, HVp), lambda b, i, s: (0, 0)),
        ]
        out_specs = pl.BlockSpec((1, 1, 1, HVp),
                                 lambda b, i, s: (b, i, 0, 0))
        scratch_shapes = [
            pltpu.VMEM((1, H), jnp.float32),    # running max  m
            pltpu.VMEM((1, H), jnp.float32),    # running sum  l
            pltpu.VMEM((H, HVp), jnp.float32),  # running p^T V accumulator
        ]
        dim_sem = ("parallel", "parallel", "arbitrary")

    out4 = pl.pallas_call(
        kernel,
        out_shape=out_shape,
        grid_spec=pltpu.PrefetchScalarGridSpec(
            num_scalar_prefetch=0,
            grid=grid,
            in_specs=in_specs,
            out_specs=out_specs,
            scratch_shapes=scratch_shapes,
        ),
        compiler_params=pltpu.CompilerParams(
            dimension_semantics=dim_sem,
            vmem_limit_bytes=vmem_limit),
    )(x4, wscore, wv_p, bv_p, eexp)

    return out4[:, :, 0, :HV]


def _reference_forward(x, params, *, n_heads, scale_size, scale_num,
                       softmax_scale=None):
    """Pure-JAX mirror of the PyTorch MultiScaleDecompLayer.forward (eval)."""
    B, _, d_model = x.shape
    wq, bq = params["wq"], params["bq"]
    wk, bk = params["wk"], params["bk"]
    wv, bv = params["wv"], params["bv"]
    intra = params["intra_embeddings"]
    H = n_heads
    dk = wq.shape[1] // H
    dv = wv.shape[1] // H
    scale = softmax_scale if softmax_scale is not None else 1.0 / math.sqrt(dk)

    outs = []
    for i in range(scale_num):
        t = x[:, i * scale_size:(i + 1) * scale_size, :]
        L = t.shape[1]
        emb = jnp.broadcast_to(intra[i], (B, 1, d_model))
        q = (jnp.dot(emb, wq) + bq).reshape(B, 1, H, dk)
        k = (jnp.dot(t, wk) + bk).reshape(B, L, H, dk)
        v = (jnp.dot(t, wv) + bv).reshape(B, L, H, dv)
        scores = jnp.einsum('blhe,bshe->bhls', q, k)
        a = jax.nn.softmax(scale * scores, axis=-1)
        outs.append(jnp.einsum('bhls,bshd->blhd', a, v))   # (B, 1, H, dv)
    cat = jnp.concatenate(outs, axis=1)                    # (B, scale_num, H, dv)
    return cat.reshape(B, scale_num, -1)


if __name__ == "__main__":
    key = jax.random.PRNGKey(0)
    ks = jax.random.split(key, 8)

    B, d_model, n_heads, scale_num = 2, 32, 4, 4
    dk = dv = d_model // n_heads

    params = {
        "wq": jax.random.normal(ks[1], (d_model, n_heads * dk), jnp.float32)
              / math.sqrt(d_model),
        "bq": 0.1 * jax.random.normal(ks[2], (n_heads * dk,), jnp.float32),
        "wk": jax.random.normal(ks[3], (d_model, n_heads * dk), jnp.float32)
              / math.sqrt(d_model),
        "bk": 0.1 * jax.random.normal(ks[4], (n_heads * dk,), jnp.float32),
        "wv": jax.random.normal(ks[5], (d_model, n_heads * dv), jnp.float32)
              / math.sqrt(d_model),
        "bv": 0.1 * jax.random.normal(ks[6], (n_heads * dv,), jnp.float32),
        "intra_embeddings": jax.random.uniform(
            ks[7], (scale_num, 1, 1, d_model), jnp.float32),
    }

    def check(scale_size, compute_dtype, max_block_s, atol, tag):
        seq_len = scale_size * scale_num
        x = jax.random.normal(ks[0], (B, seq_len, d_model), dtype=jnp.float32)
        out = multi_scale_decomp_forward(
            x, params, n_heads=n_heads, scale_size=scale_size,
            scale_num=scale_num, compute_dtype=compute_dtype,
            max_block_s=max_block_s)
        out = jax.block_until_ready(out)
        ref = _reference_forward(
            x, params, n_heads=n_heads, scale_size=scale_size,
            scale_num=scale_num)
        assert out.shape == (B, scale_num, n_heads * dv), (tag, out.shape)
        err = float(jnp.max(jnp.abs(out - ref)))
        assert err < atol, (tag, err)

    # 1) Default fast path: bf16 operands, single fat key tile.
    check(scale_size=8, compute_dtype=jnp.bfloat16, max_block_s=None,
          atol=5e-2, tag="bf16-single-pass")
    # 2) f32 operands, single pass (tight numerical check).
    check(scale_size=8, compute_dtype=jnp.float32, max_block_s=None,
          atol=5e-3, tag="f32-single-pass")
    # 3) Online-softmax path with a padded + masked key tail (S=20, tile=8).
    check(scale_size=20, compute_dtype=jnp.float32, max_block_s=8,
          atol=5e-3, tag="f32-online-masked")

    print("KERNEL_OK")
</pallas_src>

<mosaic_0001>
module attributes {stable_mosaic.version = 11 : i64} {
  func.func @_single_pass_kernel(%arg0: i32, %arg1: i32, %arg2: memref<1x1x8x32xbf16, #tpu.memory_space<vmem>>, %arg3: memref<1x32x4xbf16, #tpu.memory_space<vmem>>, %arg4: memref<32x128xbf16, #tpu.memory_space<vmem>>, %arg5: memref<1x128xf32, #tpu.memory_space<vmem>>, %arg6: memref<4x128xf32, #tpu.memory_space<vmem>>, %arg7: memref<1x1x1x128xf32, #tpu.memory_space<vmem>>) attributes {dimension_semantics = [#tpu.dimension_semantics<parallel>, #tpu.dimension_semantics<parallel>], iteration_bounds = array<i64: 2, 4>, scalar_prefetch = 0 : i64, scratch_operands = 0 : i64, tpu.core_type = #tpu.core_type<tc>, window_params = [{transform_indices = @transform_0, window_bounds = array<i64: 1, 1, 8, 32>}, {transform_indices = @transform_1, window_bounds = array<i64: 1, 32, 4>}, {pipeline_mode = #tpu.pipeline_mode<synchronous>, transform_indices = @transform_2, window_bounds = array<i64: 32, 128>}, {pipeline_mode = #tpu.pipeline_mode<synchronous>, transform_indices = @transform_3, window_bounds = array<i64: 1, 128>}, {pipeline_mode = #tpu.pipeline_mode<synchronous>, transform_indices = @transform_4, window_bounds = array<i64: 4, 128>}, {transform_indices = @transform_5, window_bounds = array<i64: 1, 1, 1, 128>}]} {
    %c0 = arith.constant 0 : index
    %c0_0 = arith.constant 0 : index
    %c0_1 = arith.constant 0 : index
    %c0_2 = arith.constant 0 : index
    %0 = vector.load %arg2[%c0, %c0_0, %c0_1, %c0_2] : memref<1x1x8x32xbf16, #tpu.memory_space<vmem>>, vector<1x1x8x32xbf16>
    %1 = vector.shape_cast %0 : vector<1x1x8x32xbf16> to vector<8x32xbf16>
    %c0_3 = arith.constant 0 : index
    %c0_4 = arith.constant 0 : index
    %c0_5 = arith.constant 0 : index
    %2 = vector.load %arg3[%c0_3, %c0_4, %c0_5] : memref<1x32x4xbf16, #tpu.memory_space<vmem>>, vector<1x32x4xbf16>
    %3 = vector.shape_cast %2 : vector<1x32x4xbf16> to vector<32x4xbf16>
    %cst = arith.constant dense<0.000000e+00> : vector<8x4xf32>
    %4 = tpu.matmul %1, %3, %cst {dimension_numbers = #tpu.dot_dimension_numbers<[1], [0], [0], [1], [0, 0, 1, 1], [], []>} : vector<8x32xbf16>, vector<32x4xbf16>, vector<8x4xf32> -> vector<8x4xf32>
    %cst_6 = arith.constant dense<0xFF800000> : vector<4xf32>
    %5 = vector.multi_reduction <maximumf>, %4, %cst_6 [0] : vector<8x4xf32> to vector<4xf32>
    %6 = vector.shape_cast %5 : vector<4xf32> to vector<1x4xf32>
    %7 = vector.broadcast %6 : vector<1x4xf32> to vector<8x4xf32>
    %8 = arith.subf %4, %7 : vector<8x4xf32>
    %9 = math.exp %8 : vector<8x4xf32>
    %cst_7 = arith.constant dense<0.000000e+00> : vector<4xf32>
    %10 = vector.multi_reduction <add>, %9, %cst_7 [0] : vector<8x4xf32> to vector<4xf32>
    %11 = vector.shape_cast %10 : vector<4xf32> to vector<1x4xf32>
    %c0_8 = arith.constant 0 : index
    %c0_9 = arith.constant 0 : index
    %12 = vector.load %arg4[%c0_8, %c0_9] : memref<32x128xbf16, #tpu.memory_space<vmem>>, vector<32x128xbf16>
    %cst_10 = arith.constant dense<0.000000e+00> : vector<8x128xf32>
    %13 = tpu.matmul %1, %12, %cst_10 {dimension_numbers = #tpu.dot_dimension_numbers<[1], [0], [0], [1], [0, 0, 1, 1], [], []>} : vector<8x32xbf16>, vector<32x128xbf16>, vector<8x128xf32> -> vector<8x128xf32>
    %cst_11 = arith.constant dense<0.000000e+00> : vector<4x128xf32>
    %14 = tpu.matmul %9, %13, %cst_11 {dimension_numbers = #tpu.dot_dimension_numbers<[0], [0], [1], [1], [0, 1, 1, 1], [], []>} : vector<8x4xf32>, vector<8x128xf32>, vector<4x128xf32> -> vector<4x128xf32>
    %c0_12 = arith.constant 0 : index
    %c0_13 = arith.constant 0 : index
    %15 = vector.load %arg6[%c0_12, %c0_13] : memref<4x128xf32, #tpu.memory_space<vmem>>, vector<4x128xf32>
    %16 = arith.mulf %14, %15 : vector<4x128xf32>
    %cst_14 = arith.constant dense<0.000000e+00> : vector<128xf32>
    %17 = vector.multi_reduction <add>, %16, %cst_14 [0] : vector<4x128xf32> to vector<128xf32>
    %18 = vector.shape_cast %17 : vector<128xf32> to vector<1x128xf32>
    %cst_15 = arith.constant dense<0.000000e+00> : vector<1x128xf32>
    %19 = tpu.matmul %11, %15, %cst_15 {dimension_numbers = #tpu.dot_dimension_numbers<[1], [0], [0], [1], [0, 0, 1, 1], [], []>} : vector<1x4xf32>, vector<4x128xf32>, vector<1x128xf32> -> vector<1x128xf32>
    %20 = arith.divf %18, %19 : vector<1x128xf32>
    %c0_16 = arith.constant 0 : index
    %c0_17 = arith.constant 0 : index
    %21 = vector.load %arg5[%c0_16, %c0_17] : memref<1x128xf32, #tpu.memory_space<vmem>>, vector<1x128xf32>
    %22 = arith.addf %20, %21 : vector<1x128xf32>
    %c0_18 = arith.constant 0 : index
    %c0_19 = arith.constant 0 : index
    %c0_20 = arith.constant 0 : index
    %c0_21 = arith.constant 0 : index
    %23 = vector.load %arg7[%c0_18, %c0_19, %c0_20, %c0_21] : memref<1x1x1x128xf32, #tpu.memory_space<vmem>>, vector<1x1x1x128xf32>
    %24 = vector.shape_cast %23 : vector<1x1x1x128xf32> to vector<1x128xf32>
    %25 = vector.shape_cast %22 : vector<1x128xf32> to vector<1x1x1x128xf32>
    tpu.vector_store %arg7[%c0_18, %c0_19, %c0_20, %c0_21], %25 {strides = array<i32>} : memref<1x1x1x128xf32, #tpu.memory_space<vmem>>, vector<1x1x1x128xf32>,
    return
  }
  func.func @transform_0(%arg0: i32, %arg1: i32) -> (i32, i32, i32, i32) {
    %c0_i32 = arith.constant 0 : i32
    %c0_i32_0 = arith.constant 0 : i32
    %c0_i32_1 = arith.constant 0 : i32
    return %arg0, %arg1, %c0_i32, %c0_i32_0 : i32, i32, i32, i32
  }
  func.func @transform_1(%arg0: i32, %arg1: i32) -> (i32, i32, i32) {
    %c0_i32 = arith.constant 0 : i32
    %c0_i32_0 = arith.constant 0 : i32
    %c0_i32_1 = arith.constant 0 : i32
    return %arg1, %c0_i32, %c0_i32_0 : i32, i32, i32
  }
  func.func @transform_2(%arg0: i32, %arg1: i32) -> (i32, i32) {
    %c0_i32 = arith.constant 0 : i32
    %c0_i32_0 = arith.constant 0 : i32
    %c0_i32_1 = arith.constant 0 : i32
    return %c0_i32, %c0_i32_0 : i32, i32
  }
  func.func @transform_3(%arg0: i32, %arg1: i32) -> (i32, i32) {
    %c0_i32 = arith.constant 0 : i32
    %c0_i32_0 = arith.constant 0 : i32
    %c0_i32_1 = arith.constant 0 : i32
    return %c0_i32, %c0_i32_0 : i32, i32
  }
  func.func @transform_4(%arg0: i32, %arg1: i32) -> (i32, i32) {
    %c0_i32 = arith.constant 0 : i32
    %c0_i32_0 = arith.constant 0 : i32
    %c0_i32_1 = arith.constant 0 : i32
    return %c0_i32, %c0_i32_0 : i32, i32
  }
  func.func @transform_5(%arg0: i32, %arg1: i32) -> (i32, i32, i32, i32) {
    %c0_i32 = arith.constant 0 : i32
    %c0_i32_0 = arith.constant 0 : i32
    %c0_i32_1 = arith.constant 0 : i32
    return %arg0, %arg1, %c0_i32, %c0_i32_0 : i32, i32, i32, i32
  }
}

</mosaic_0001>

<bundles_post_ra>
// kernel: tpu_custom_call.1
= control target key start
LH: loop header
LB: loop body
LE: loop exit
PB: predicated region body
PF: predicated region fallthrough
CT: control target
= control target key end

     0   :  { %10 = vsyncpa [#allocation3], 0  ;;  %s1131_s0 = inlined_call_operand.vmem [shape: bf16[2,4,8,32], index: 0, kind: input, shape index: {}]   ;;  %s1132_s1 = inlined_call_operand.vmem [shape: bf16[4,32,4], index: 1, kind: input, shape index: {}]   ;;  %s1133_s2 = inlined_call_operand.vmem [shape: bf16[32,128], index: 2, kind: input, shape index: {}]   ;;  %s1134_s3 = inlined_call_operand.vmem [shape: f32[1,128], index: 3, kind: input, shape index: {}]   ;;  %s1135_s4 = inlined_call_operand.vmem [shape: f32[4,128], index: 4, kind: input, shape index: {}]   ;;  %s1136_s5 = inlined_call_operand.hbm [shape: f32[2,4,1,128], index: 5, kind: output, shape index: {}]  }
   0x1   :  { %12 = vsyncpa [#allocation3 + $0x1], 0  ;;  %s970_s18 = smov 0   ;;  %s972_s19 = smov 0  }
   0x2   :  { %s974_s20 = smov 0   ;;  %s976_s21 = smov 0  }
   0x3   :  { %s978_s22 = smov 0   ;;  %s980_s23 = smov 0  }
   0x4   :  { %s982_s24 = smov 0   ;;  %s984_s25 = smov 0  }
   0x5 LB: > { %s701_s26 = sadd.s32 4294967295, %s935_s25   ;;  %s702_s27 = sadd.s32 4294967294, %s935_s25   ;;  %s935_s25 = sphi %s984_s25, %s18_s25   ;;  %s931_s24 = sphi %s982_s24, %s1151_s24   ;;  %s927_s23 = sphi %s980_s23, %s1150_s23   ;;  %s923_s22 = sphi %s978_s22, %s1149_s22   ;;  %s919_s21 = sphi %s976_s21, %s1148_s21   ;;  %s915_s20 = sphi %s974_s20, %s1147_s20   ;;  %s911_s19 = sphi %s972_s19, %s1146_s19   ;;  %s907_s18 = sphi %s970_s18, %s1145_s18  }
   0x6   : > { %s27_s28 = sadd.s32 1, %s927_s23  ;;  %s30_s29 = sadd.s32 1, %s931_s24 }
   0x7   : > { %p28_p0 = scmp.ge.s32.totalorder %s27_s28, 4  ;;  %p166_p1 = scmp.ne.s32.totalorder %s915_s20, %s911_s19 }
   0x8   : > { %p167_p2 = scmp.eq.s32.totalorder %s701_s26, 7  ;;  %p172_p5 = scmp.ne.s32.totalorder %s911_s19, %s907_s18 }
   0x9   : > { %s1153_s28 = smov (%p28_p0, %s27_s28), 0  ;;  %s1155_s29 = smov (!%p28_p0, %s30_s29), %s931_s24 }
   0xa   : > { %1139 = sst [smem:[#allocation5_spill]] %s1153_s28  ;;  %s152_s30 = ssub.s32 %s927_s23, %s1153_s28 }
   0xb   : > { %p1021_p3 = por %p167_p2, %p166_p1  ;;  %p32_p4 = scmp.ge.s32.totalorder %s1155_s29, 2 }
   0xc   : > { %p173_p6 = scmp.eq.s32.totalorder %s702_s27, 7  ;;  %p705_p7 = scmp.ge.s32.totalorder %s935_s25, 1 }
   0xd   : > { %s1157_s29 = smov (%p32_p4, %s1155_s29), 0  ;;  %p219_p9 = scmp.lt.s32.totalorder %s935_s25, 9 }
   0xe   : > { %1141 = sst [smem:[#allocation6_spill]] %s1157_s29  ;;  %p1030_p8 = por %p173_p6, %p172_p5 }
   0xf   : > { %s151_s8 = ssub.s32 %s931_s24, %s1157_s29  ;;  %s156_s9 = sadd.s32 1, %s915_s20 }
  0x10   : > { %s153_s10 = sor.u32 %s152_s30, %s151_s8  ;;  %p220_p10 = pnand %p705_p7, %p219_p9 }
  0x11   : > { %p154_p11 = scmp.eq.s32.totalorder %s153_s10, 0  ;;  %p256_p12 = scmp.lt.s32.totalorder (!%p220_p10), %s919_s21, 3  ;;  %v835_v0 = vld [vmem:[%s1133_s2] sm:$0xff] (!%p220_p10)   ;;  %v937_v1 = vmov (!%p220_p10), 0.0   ;;  %vm938_vm0 = vmmov (!%p220_p10), 0   ;;  %v836_v2 = vld [vmem:[%s1133_s2 + $0x8] sm:$0xff] (!%p220_p10)  }
  0x12   : > { %223 = sbr.rel (%p220_p10) target bundleno = 651 (0x28b), region = 40  ;;  %p254_p13 = scmp.lt.s32.totalorder (!%p220_p10), %s923_s22, 1  ;;  %734 = vmatprep.subr.bf16.mxu0 (!%p220_p10), %v937_v1  ;;  %738 = vmatprep.mubr.msk.bf16.mxu0 (!%p220_p10), %vm938_vm0, %v937_v1  ;;  %vm285_vm1 = vcmask (!%p220_p10), 261120   ;;  %v509_v6 = vld [vmem:[%s1135_s4] sm:$0xf] (!%p220_p10)  ;;  %vm511_vm2 = vcmask (!%p220_p10), 1043456  }
  0x13   : > { %s1039_s11 = scalar_select %p154_p11, %s915_s20, %s156_s9  }
  0x14   : > { %742 = vmatprep.subr.bf16.mxu1 (!%p220_p10), %v937_v1  ;;  %746 = vmatprep.mubr.msk.bf16.mxu1 (!%p220_p10), %vm938_vm0, %v937_v1  ;;  %vm329_vm3 = vcmask (!%p220_p10), 31744   ;;  %vm435_vm4 = vcmask (!%p220_p10), 64512   ;;  %s719_s29 = sshll.u32 (!%p220_p10), %s923_s22, 2  ;;  %v597_v46 = vld [vmem:[%s1134_s3] sm:$0x1] (!%p220_p10)  ;;  %s939_s13 = smov (!%p220_p10), [#allocation2]  }
  0x15   : > { %743 = vmatpush3.bf16.msra.mxu1 (!%p220_p10), %v835_v0  ;;  %s611_s16 = sadd.s32 (!%p220_p10), %s919_s21, %s719_s29 }
  0x16   : > { %744 = vmatprep.subr.bf16.mxu1 (!%p220_p10), %v937_v1  ;;  %s720_s27 = sshll.u32 (!%p220_p10), %s611_s16, 4 }
  0x19   : > { %s257_s14 = scalar_select %p256_p12, %s919_s21, 3  ;;  %745 = vmatpush3.bf16.msra.mxu1 %v836_v2 }
  0x1a   : > { %s255_s15 = scalar_select %p254_p13, %s923_s22, 1  ;;  %755 = vmatprep.subr.mxu1 %v937_v1 }
  0x1b   : > { %s723_s26 = sshll.u32 %s257_s14, 4 }
  0x1c   : > { %s266_s8 = scalar_lea.vmem %s1132_s1, %s723_s26  ;;  %s706_s9 = sshll.u32 %s255_s15, 2 }
  0x1d   : > { %v833_v3 = vld [vmem:[%s266_s8] sm:$0xff]   ;;  %s259_s10 = sadd.s32 %s706_s9, %s257_s14  ;;  %v834_v4 = vld [vmem:[%s266_s8 + $0x8] sm:$0xff]   ;;  %s845_s14 = sshll.u32 %s939_s13, 4  ;;  %s846_s14 = int_to_ptr.vmem [resolvable:$false] %s845_s14 }
  0x1e   : > { %s707_s12 = sshll.u32 %s259_s10, 2  ;;  %735 = vmatpush3.bf16.msra.mxu0 %v833_v3  ;;  %s847_s15 = scalar_lea.vmem %s846_s14, 32 }
  0x1f   : > { %s261_s28 = scalar_lea.vmem %s1131_s0, %s707_s12  ;;  %736 = vmatprep.subr.bf16.mxu0 %v937_v1  ;;  %s1078_s12 = scalar_lea.hbm %s1136_s5, %s720_s27 }
  0x20   : > { %v268_v5 = vld [vmem:[%s261_s28] sm:$0xf]  ;;  %s252_s28 = sand.u32 1, %s911_s19  }
  0x21   : > { %747 = vmatmul.mubr.msk.bf16.vlgmr.msra.gmra.mrb[0].mxu1 %vm285_vm1, %v268_v5  ;;  %s253_s30 = scalar_lea.vmem [#allocation2], %s252_s28  ;;  %s601_s21 = scalar_lea.sflag [#allocation3], %s252_s28 }
  0x22   : > { %757 = vmatprep.mubr.msk.f32.mxu1 %vm938_vm0, %v937_v1  ;;  %737 = vmatpush3.bf16.msra.mxu0 %v834_v4  ;;  %s615_s8 = sshll.u32 %s253_s30, 4  ;;  %s1080_s8 = int_to_ptr.vmem [resolvable:$true] %s615_s8 }
  0x23   : > { %750 = vmatprep.subr.mxu0 %v937_v1  ;;  %756 = vmatpush3.msk.msra.mxu1 %vm511_vm2, %v509_v6  ;;  %s841_s22 = scalar_lea.vmem %s1080_s8, 16  ;;  %p848_p4 = scmp.lt.s32.totalorder %s1080_s8, %s846_s14 }
  0x24   : > { %p842_p0 = scmp.ne.s32.totalorder %s1080_s8, %s841_s22  ;;  %p849_p5 = scmp.lt.s32.totalorder %s847_s15, %s841_s22 }
  0x25   : > { %739 = vmatmul.mubr.msk.bf16.vlgmr.msra.gmra.mrb[0].mxu0 %vm285_vm1, %v268_v5 }
  0x26   : > { %752 = vmatprep.mubr.msk.f32.mxu0 %vm938_vm0, %v937_v1  ;;  %p843_p1 = pnand %p842_p0, %p1021_p3  ;;  %p850_p6 = por %p849_p5, %p848_p4 }
  0x28   : > { %p844_p2 = pneg %p843_p1 }
  0x2a   : > { %p851_p7 = pnand %p850_p6, %p844_p2 }
  0xf4   : > { %v397_v7 = vpop.f32.mrb[0].mxu1 }
  0xf5   : > { %v748_v8 = vpop.f32.mrb[1].mxu1  ;;  %751 = vmatpush3.msra.mxu0 %v397_v7 }
  0xf6   : > { %v400_v9 = vpop.f32.mrb[2].mxu1 }
  0xf7   : > { %v749_v10 = vpop.f32.mrb[3].mxu1 }
  0xf8   : > { %v323_v11 = vpop.f32.mrb[0].mxu0 }
  0xf9   : > { %v330_v12 = vsel %vm329_vm3, %v323_v11, -inf  ;;  %v740_v13 = vpop.f32.mrb[1].mxu0 }
  0xfa   : > { %v331_v14 = vrot.slane %v330_v12, 4  ;;  %v326_v15 = vpop.f32.mrb[2].mxu0 }
  0xfb   : > { %v741_v16 = vpop.f32.mrb[3].mxu0 }
  0xfc   : > { %v332_v17 = vmax.f32 %v330_v12, %v331_v14 }
  0xfe   : > { %v333_v18 = vrot.slane %v332_v17, 2 }
 0x100   : > { %v334_v19 = vmax.f32 %v332_v17, %v333_v18 }
 0x102   : > { %v335_v20 = vrot.slane %v334_v19, 1 }
 0x104   : > { %v336_v21 = vmax.f32 %v334_v19, %v335_v20 }
 0x106   : > { %v337_v22 = vsub.f32 %v323_v11, %v336_v21 }
 0x108   : > { %v338_v23 = vmul.f32 1.442695, %v337_v22 }
 0x10a   : > { %837 = vpow2.f32 %v338_v23 }
 0x114   : > { %v838_v24 = vpop.eup %837 }
 0x115   : > { %v340_v25 = vsel %vm329_vm3, %v838_v24, 0.0  ;;  %403 = vxpose.xlu0.b32.start.end [1/1] (short) (narrow) %v838_v24, 8 }
 0x116   : > { %v341_v26 = vrot.slane %v340_v25, 4 }
 0x118   : > { %v342_v27 = vadd.f32 %v341_v26, %v340_v25 }
 0x11a   : > { %v343_v28 = vrot.slane %v342_v27, 2 }
 0x11c   : > { %v344_v29 = vadd.f32 %v343_v28, %v342_v27 }
 0x11e   : > { %v345_v30 = vrot.slane %v344_v29, 1 }
 0x120   : > { %v346_v31 = vadd.f32 %v345_v30, %v344_v29 }
 0x122   : > { %758 = vmatmul.mubr.msk.f32.vlgmr.msra.gmra.mrb[4].mxu1 %vm329_vm3, %v346_v31 }
 0x195   : > { %v419_v32 = vpop.trf.xlu0 }
 0x196   : > { %753 = vmatmul.mubr.msk.f32.vlgmr.msra.gmra.mrb[4].mxu0 %vm435_vm4, %v419_v32 }
 0x1f5   : > { %v591_v33 = vpop.f32.mrb[4].mxu1 }
 0x1f6   : > { %v759_v34 = vpop.f32.mrb[5].mxu1  ;;  %839 = vrcp.f32 %v591_v33 }
 0x200   : > { %v840_v45 = vpop.eup %839 }
 0x269   : > { %v505_v35 = vpop.f32.mrb[4].mxu0 }
 0x26a   : > { %v510_v36 = vmul.f32 %v509_v6, %v505_v35  ;;  %v754_v37 = vpop.f32.mrb[5].mxu0 }
 0x26c   : > { %v512_v38 = vsel %vm511_vm2, %v510_v36, 0.0 }
 0x26d   : > { %v513_v39 = vrot.slane %v512_v38, 4 }
 0x26f   : > { %v514_v40 = vadd.f32 %v513_v39, %v512_v38 }
 0x271   : > { %v515_v41 = vrot.slane %v514_v40, 2 }
 0x273   : > { %v516_v42 = vadd.f32 %v515_v41, %v514_v40 }
 0x275   : > { %v517_v43 = vrot.slane %v516_v42, 1 }
 0x277   : > { %v518_v44 = vadd.f32 %v517_v43, %v516_v42 }
 0x279   : > { %v596_v47 = vmul.f32 %v840_v45, %v518_v44 }
 0x27b   : > { %v598_v48 = vadd.f32 %v597_v46, %v596_v47 }
 0x27d   : > { %599 = vst [vmem:[%s253_s30] sm:$0x1] %v598_v48 }
 0x27e   : > { %854 = shalt.err (!%p851_p7)
}
 0x27f   : > { %s855_s28 = scalar_lea.hbm %s1078_s12, 16  ;;  %s859_s17 = scalar_lea.hbm %s1136_s5, 128 }
 0x280   : > { %p856_p9 = scmp.ne.s32.totalorder %s1078_s12, %s855_s28  ;;  %p860_p12 = scmp.lt.u32.totalorder %s1078_s12, %s1136_s5 }
 0x281   : > { %p861_p13 = scmp.lt.u32.totalorder %s859_s17, %s855_s28  ;;  %p863_p1 = scmp.lt.u32.totalorder %s855_s28, %s1078_s12 }
 0x282   : > { %p857_p10 = pnand %p856_p9, %p1021_p3 }
 0x283   : > { %p862_p0 = por %p861_p13, %p860_p12 }
 0x284   : > { %p858_p11 = pneg %p857_p10 }
 0x285   : > { %p864_p2 = por %p863_p1, %p862_p0 }
 0x287   : > { %p865_p4 = pnand %p864_p2, %p858_p11 }
 0x289   : > { %868 = shalt.err (!%p865_p4)
}
 0x28a   : > { %760 = dma.vmem_to_hbm [thread:$0]  (%p1021_p3), %s1080_s8, 16, %s1078_s12, %s601_s21  }
 0x28b PF: > { %p766_p5 = scmp.ge.s32.totalorder %s935_s25, 2  ;;  %s627_s30 = sand.u32 1, %s907_s18  }
 0x28c   : > { %s628_s9 = scalar_lea.sflag [#allocation3], %s627_s30 }
 0x28d   : > { %p763_p6 = pnand %p766_p5, %p1030_p8 }
 0x28f   : > { %902 = dma.done.wait (!%p763_p6), %s628_s9, 16  }
 0x290   : > { %904 = vsyncadd (!%p763_p6), %s628_s9, 4294967280  ;;  %s18_s25 = sadd.s32 1, %s935_s25   ;;  %s1143_s6 = sld [smem:[#allocation5_spill]] }
 0x291   : > { %p15_p7 = scmp.ge.s32.totalorder %s18_s25, 10   ;;  %s1144_s8 = sld [smem:[#allocation6_spill]] }
 0x292   : > { %s1145_s18 = smov %s911_s19  ;;  %s1146_s19 = smov %s915_s20 }
 0x293   : > { %s1147_s20 = smov %s1039_s11  ;;  %s1148_s21 = smov %s927_s23 }
 0x294   : > { %s1149_s22 = smov %s931_s24  ;;  %17 = sbr.rel (!%p15_p7) target bundleno = 5 (0x5), region = 78 }
 0x296   : > { %s1150_s23 = smov %s1143_s6 }
 0x297   : > { %s1151_s24 = smov %s1144_s8 }
 0x29b   :  { %632 = vsyncpa [#allocation3], 1 }
 0x29c   :  { %634 = vsyncpa [#allocation3 + $0x1], 1 }

</bundles_post_ra>
